<compile_context>
chip_gen: v6e
topology: v6e:2x2x1
jax: 0.10.0
libtpu: 0.0.40
codegen_flags: <defaults>
</compile_context>

<pallas_src>
import jax
import jax.numpy as jnp
from jax.experimental import pallas as pl
from jax.experimental.pallas import tpu as pltpu


def _round_up(n, m):
    return ((n + m - 1) // m) * m


def _pad_to(a, shape):
    pads = [(0, t - s) for s, t in zip(a.shape, shape)]
    return jnp.pad(a, pads) if any(p[1] for p in pads) else a


def _choose_tb(B, D, x_itemsize, H_pad):
    """Pick the batch tile.

    Large enough to amortize the ~0.35 us per-grid-step overhead (cap 4096
    rows), small enough that the double-buffered x tile + output tile + live
    f32 hidden intermediates stay well inside the 48 MiB VMEM limit, and with
    a tile count nudged to an even number (>1) so the v7x 2-TensorCore
    parallel split is balanced.
    """
    cap = 4096
    budget = 32 << 20                      # consistent with vmem_limit_bytes=48 MiB
    row_bytes = (D * x_itemsize * 2        # x tile, double-buffered
                 + 4 * 2                   # out tile, double-buffered
                 + 4 * H_pad * 4)          # ~4 live f32 hidden intermediates
    vmem_cap = max(8, (budget // row_bytes) // 8 * 8)
    tb = max(8, min(cap, vmem_cap, _round_up(B, 8)))
    n = -(-B // tb)
    if n > 1 and n % 2 == 1:               # balance across v7x's 2 TensorCores
        tb = max(8, _round_up(-(-B // (n + 1)), 8))
    return tb


def critic_kernel(x_ref, w1_ref, b1_ref, w2_ref, b2_ref, w3_ref, b3_ref, out_ref):
    # fc1 + ReLU  (MXU matmul, f32 accumulation; bias/ReLU in f32 on the VPU)
    h1 = jnp.dot(x_ref[...], w1_ref[...],
                 preferred_element_type=jnp.float32) + b1_ref[...]
    h1 = jnp.maximum(h1, 0.0)

    # dropout(p=0.1) -> identity in eval mode
    # TODO(synk): training-mode dropout (prng_seed + stateful_bernoulli) not emitted.

    # fc2 + ReLU (cast h1 to the MXU input dtype in-register; no-op for f32)
    h2 = jnp.dot(h1.astype(w2_ref.dtype), w2_ref[...],
                 preferred_element_type=jnp.float32) + b2_ref[...]
    h2 = jnp.maximum(h2, 0.0)

    # dropout(p=0.1) -> identity in eval mode

    # fc3 (output dim 1): VPU multiply + XLU lane-reduce instead of an N=1 MXU
    # matmul; b3 is an SMEM scalar.
    v = jnp.sum(h2 * w3_ref[...], axis=-1, keepdims=True) + b3_ref[0]

    out_ref[...] = v.astype(out_ref.dtype)


def prepare_params(params, *, mxu_dtype=jnp.float32):
    """One-time param prep: pad hidden dim to a lane multiple (exact: zero
    rows/cols + ReLU(0)=0 contribute nothing) and pre-cast the MXU weight
    operands (w1, w2) to `mxu_dtype`. Biases, w3 and b3 stay f32 (VPU path)."""
    D, H = params["w1"].shape
    H_pad = _round_up(H, 128)
    return {
        "w1": _pad_to(params["w1"], (D, H_pad)).astype(mxu_dtype),
        "b1": _pad_to(params["b1"].reshape(1, H), (1, H_pad)).astype(jnp.float32),
        "w2": _pad_to(params["w2"], (H_pad, H_pad)).astype(mxu_dtype),
        "b2": _pad_to(params["b2"].reshape(1, H), (1, H_pad)).astype(jnp.float32),
        "w3": _pad_to(params["w3"].reshape(1, H), (1, H_pad)).astype(jnp.float32),
        "b3": params["b3"].reshape(1,).astype(jnp.float32),
    }


def critic_forward(x, prepared, *, tb=None):
    """x: (B, input_size). prepared: output of prepare_params. Returns (B, 1) f32."""
    B, D = x.shape
    H_pad = prepared["w1"].shape[1]
    mxu_dtype = prepared["w1"].dtype
    x = x.astype(mxu_dtype)                 # bf16 path: halve the x HBM stream

    TB = tb if tb is not None else _choose_tb(B, D, jnp.dtype(mxu_dtype).itemsize, H_pad)
    n_tiles = pl.cdiv(B, TB)                # no wrapper pad; Pallas clips boundary tile

    const2d = lambda shape: pl.BlockSpec(shape, lambda i: (0, 0))

    out = pl.pallas_call(
        critic_kernel,
        out_shape=jax.ShapeDtypeStruct((B, 1), jnp.float32),
        grid=(n_tiles,),
        in_specs=[
            pl.BlockSpec((TB, D), lambda i: (i, 0)),   # x: batch-tiled, pipelined
            const2d((D, H_pad)),                        # weights/biases resident
            const2d((1, H_pad)),
            const2d((H_pad, H_pad)),
            const2d((1, H_pad)),
            const2d((1, H_pad)),
            pl.BlockSpec(memory_space=pltpu.MemorySpace.SMEM),  # b3 scalar
        ],
        out_specs=pl.BlockSpec((TB, 1), lambda i: (i, 0)),
        compiler_params=pltpu.CompilerParams(
            dimension_semantics=("parallel",),          # megacore sharding on v7x
            vmem_limit_bytes=48 << 20,                  # under v7x 64 MiB physical
        ),
    )(x, prepared["w1"], prepared["b1"], prepared["w2"], prepared["b2"],
      prepared["w3"], prepared["b3"])
    return out


def init_params(key, input_size, hidden_size=64):
    """Deterministic synthetic init (uniform, PyTorch-Linear-like bounds)."""
    ks = jax.random.split(key, 6)

    def linear(kw, kb, fan_in, fan_out):
        bound = 1.0 / jnp.sqrt(float(fan_in))
        w = jax.random.uniform(kw, (fan_in, fan_out), jnp.float32, -bound, bound)
        b = jax.random.uniform(kb, (1, fan_out), jnp.float32, -bound, bound)
        return w, b

    w1, b1 = linear(ks[0], ks[1], input_size, hidden_size)
    w2, b2 = linear(ks[2], ks[3], hidden_size, hidden_size)
    w3, b3 = linear(ks[4], ks[5], hidden_size, 1)
    return {"w1": w1, "b1": b1, "w2": w2, "b2": b2, "w3": w3, "b3": b3}


def critic_reference(x, p):
    h1 = jnp.maximum(x @ p["w1"] + p["b1"], 0.0)
    h2 = jnp.maximum(h1 @ p["w2"] + p["b2"], 0.0)
    return jnp.sum(h2 * p["w3"].reshape(1, -1), axis=-1, keepdims=True) + p["b3"]


if __name__ == "__main__":
    key = jax.random.PRNGKey(0)
    k_x, k_p = jax.random.split(key)

    batch, input_size, hidden = 8, 32, 64
    x = jax.random.normal(k_x, (batch, input_size), jnp.float32)
    params = init_params(k_p, input_size, hidden)
    ref = critic_reference(x, params)

    # f32 MXU-input path
    prepared_f32 = prepare_params(params)
    value = jax.block_until_ready(critic_forward(x, prepared_f32))
    assert value.shape == (batch, 1), value.shape
    assert jnp.allclose(value, ref, atol=1e-4, rtol=1e-4), (value, ref)

    # bf16 MXU-input path (weights pre-cast once, x cast in wrapper), f32 accumulation
    prepared_bf16 = prepare_params(params, mxu_dtype=jnp.bfloat16)
    value_bf16 = jax.block_until_ready(critic_forward(x, prepared_bf16))
    assert value_bf16.shape == (batch, 1), value_bf16.shape
    assert jnp.allclose(value_bf16, ref, atol=5e-2, rtol=5e-2), (value_bf16, ref)

    # larger, non-8-multiple batch: single auto-sized tile, partial boundary rows
    big_b = 1100
    x_big = jax.random.normal(k_x, (big_b, input_size), jnp.float32)
    ref_big = critic_reference(x_big, params)
    v_big = jax.block_until_ready(critic_forward(x_big, prepared_f32))
    assert v_big.shape == (big_b, 1), v_big.shape
    assert jnp.allclose(v_big, ref_big, atol=1e-4, rtol=1e-4)

    # multi-tile grid with a partial last tile (no wrapper pad, Pallas clipping)
    v_big_t = jax.block_until_ready(critic_forward(x_big, prepared_f32, tb=256))
    assert v_big_t.shape == (big_b, 1), v_big_t.shape
    assert jnp.allclose(v_big_t, ref_big, atol=1e-4, rtol=1e-4)

    print("KERNEL_OK")
</pallas_src>

<mosaic_0001>
module attributes {stable_mosaic.version = 11 : i64} {
  func.func @critic_kernel(%arg0: i32, %arg1: memref<8x32xf32, #tpu.memory_space<vmem>>, %arg2: memref<32x128xf32, #tpu.memory_space<vmem>>, %arg3: memref<1x128xf32, #tpu.memory_space<vmem>>, %arg4: memref<128x128xf32, #tpu.memory_space<vmem>>, %arg5: memref<1x128xf32, #tpu.memory_space<vmem>>, %arg6: memref<1x128xf32, #tpu.memory_space<vmem>>, %arg7: memref<1xf32, #tpu.memory_space<smem>>, %arg8: memref<8x1xf32, #tpu.memory_space<vmem>>) attributes {dimension_semantics = [#tpu.dimension_semantics<parallel>], iteration_bounds = array<i64: 1>, scalar_prefetch = 0 : i64, scratch_operands = 0 : i64, tpu.core_type = #tpu.core_type<tc>, window_params = [{transform_indices = @transform_0, window_bounds = array<i64: 8, 32>}, {pipeline_mode = #tpu.pipeline_mode<synchronous>, transform_indices = @transform_1, window_bounds = array<i64: 32, 128>}, {pipeline_mode = #tpu.pipeline_mode<synchronous>, transform_indices = @transform_2, window_bounds = array<i64: 1, 128>}, {pipeline_mode = #tpu.pipeline_mode<synchronous>, transform_indices = @transform_3, window_bounds = array<i64: 128, 128>}, {pipeline_mode = #tpu.pipeline_mode<synchronous>, transform_indices = @transform_4, window_bounds = array<i64: 1, 128>}, {pipeline_mode = #tpu.pipeline_mode<synchronous>, transform_indices = @transform_5, window_bounds = array<i64: 1, 128>}, {transform_indices = @transform_6, window_bounds = array<i64: 1>}, {transform_indices = @transform_7, window_bounds = array<i64: 8, 1>}]} {
    %c0 = arith.constant 0 : index
    %c0_0 = arith.constant 0 : index
    %0 = vector.load %arg1[%c0, %c0_0] : memref<8x32xf32, #tpu.memory_space<vmem>>, vector<8x32xf32>
    %c0_1 = arith.constant 0 : index
    %c0_2 = arith.constant 0 : index
    %1 = vector.load %arg2[%c0_1, %c0_2] : memref<32x128xf32, #tpu.memory_space<vmem>>, vector<32x128xf32>
    %cst = arith.constant dense<0.000000e+00> : vector<8x128xf32>
    %2 = tpu.matmul %0, %1, %cst {dimension_numbers = #tpu.dot_dimension_numbers<[1], [0], [0], [1], [0, 0, 1, 1], [], []>} : vector<8x32xf32>, vector<32x128xf32>, vector<8x128xf32> -> vector<8x128xf32>
    %c0_3 = arith.constant 0 : index
    %c0_4 = arith.constant 0 : index
    %3 = vector.load %arg3[%c0_3, %c0_4] : memref<1x128xf32, #tpu.memory_space<vmem>>, vector<1x128xf32>
    %4 = vector.broadcast %3 : vector<1x128xf32> to vector<8x128xf32>
    %5 = arith.addf %2, %4 : vector<8x128xf32>
    %cst_5 = arith.constant 0.000000e+00 : f32
    %6 = vector.broadcast %cst_5 : f32 to vector<8x128xf32>
    %7 = arith.maximumf %5, %6 : vector<8x128xf32>
    %c0_6 = arith.constant 0 : index
    %c0_7 = arith.constant 0 : index
    %8 = vector.load %arg4[%c0_6, %c0_7] : memref<128x128xf32, #tpu.memory_space<vmem>>, vector<128x128xf32>
    %cst_8 = arith.constant dense<0.000000e+00> : vector<8x128xf32>
    %9 = tpu.matmul %7, %8, %cst_8 {dimension_numbers = #tpu.dot_dimension_numbers<[1], [0], [0], [1], [0, 0, 1, 1], [], []>} : vector<8x128xf32>, vector<128x128xf32>, vector<8x128xf32> -> vector<8x128xf32>
    %c0_9 = arith.constant 0 : index
    %c0_10 = arith.constant 0 : index
    %10 = vector.load %arg5[%c0_9, %c0_10] : memref<1x128xf32, #tpu.memory_space<vmem>>, vector<1x128xf32>
    %11 = vector.broadcast %10 : vector<1x128xf32> to vector<8x128xf32>
    %12 = arith.addf %9, %11 : vector<8x128xf32>
    %cst_11 = arith.constant 0.000000e+00 : f32
    %13 = vector.broadcast %cst_11 : f32 to vector<8x128xf32>
    %14 = arith.maximumf %12, %13 : vector<8x128xf32>
    %c0_12 = arith.constant 0 : index
    %c0_13 = arith.constant 0 : index
    %15 = vector.load %arg6[%c0_12, %c0_13] : memref<1x128xf32, #tpu.memory_space<vmem>>, vector<1x128xf32>
    %16 = vector.broadcast %15 : vector<1x128xf32> to vector<8x128xf32>
    %17 = arith.mulf %14, %16 : vector<8x128xf32>
    %cst_14 = arith.constant dense<0.000000e+00> : vector<8xf32>
    %18 = vector.multi_reduction <add>, %17, %cst_14 [1] : vector<8x128xf32> to vector<8xf32>
    %19 = vector.shape_cast %18 : vector<8xf32> to vector<8x1xf32>
    %c0_15 = arith.constant 0 : index
    %20 = memref.load %arg7[%c0_15] : memref<1xf32, #tpu.memory_space<smem>>
    %21 = vector.broadcast %20 : f32 to vector<8x1xf32>
    %22 = arith.addf %19, %21 : vector<8x1xf32>
    %c0_16 = arith.constant 0 : index
    %c0_17 = arith.constant 0 : index
    %23 = vector.load %arg8[%c0_16, %c0_17] : memref<8x1xf32, #tpu.memory_space<vmem>>, vector<8x1xf32>
    tpu.vector_store %arg8[%c0_16, %c0_17], %22 {strides = array<i32>} : memref<8x1xf32, #tpu.memory_space<vmem>>, vector<8x1xf32>,
    return
  }
  func.func @transform_0(%arg0: i32) -> (i32, i32) {
    %c0_i32 = arith.constant 0 : i32
    %c0_i32_0 = arith.constant 0 : i32
    return %arg0, %c0_i32 : i32, i32
  }
  func.func @transform_1(%arg0: i32) -> (i32, i32) {
    %c0_i32 = arith.constant 0 : i32
    %c0_i32_0 = arith.constant 0 : i32
    %c0_i32_1 = arith.constant 0 : i32
    return %c0_i32, %c0_i32_0 : i32, i32
  }
  func.func @transform_2(%arg0: i32) -> (i32, i32) {
    %c0_i32 = arith.constant 0 : i32
    %c0_i32_0 = arith.constant 0 : i32
    %c0_i32_1 = arith.constant 0 : i32
    return %c0_i32, %c0_i32_0 : i32, i32
  }
  func.func @transform_3(%arg0: i32) -> (i32, i32) {
    %c0_i32 = arith.constant 0 : i32
    %c0_i32_0 = arith.constant 0 : i32
    %c0_i32_1 = arith.constant 0 : i32
    return %c0_i32, %c0_i32_0 : i32, i32
  }
  func.func @transform_4(%arg0: i32) -> (i32, i32) {
    %c0_i32 = arith.constant 0 : i32
    %c0_i32_0 = arith.constant 0 : i32
    %c0_i32_1 = arith.constant 0 : i32
    return %c0_i32, %c0_i32_0 : i32, i32
  }
  func.func @transform_5(%arg0: i32) -> (i32, i32) {
    %c0_i32 = arith.constant 0 : i32
    %c0_i32_0 = arith.constant 0 : i32
    %c0_i32_1 = arith.constant 0 : i32
    return %c0_i32, %c0_i32_0 : i32, i32
  }
  func.func @transform_6(%arg0: i32) -> i32 {
    %c0_i32 = arith.constant 0 : i32
    %c0_i32_0 = arith.constant 0 : i32
    return %c0_i32 : i32
  }
  func.func @transform_7(%arg0: i32) -> (i32, i32) {
    %c0_i32 = arith.constant 0 : i32
    %c0_i32_0 = arith.constant 0 : i32
    return %arg0, %c0_i32 : i32, i32
  }
}

</mosaic_0001>

<bundles_post_ra>
// kernel: tpu_custom_call.1
= control target key start
LH: loop header
LB: loop body
LE: loop exit
PB: predicated region body
PF: predicated region fallthrough
CT: control target
= control target key end

     0   :  { %13 = vsyncpa [#allocation4], 0  ;;  %s504_s0 = inlined_call_operand.hbm [shape: f32[8,32], index: 0, kind: input, shape index: {}]   ;;  %s505_s1 = inlined_call_operand.hbm [shape: f32[32,128], index: 1, kind: input, shape index: {}]   ;;  %s506_s2 = inlined_call_operand.vmem [shape: f32[1,128], index: 2, kind: input, shape index: {}]   ;;  %s507_s3 = inlined_call_operand.hbm [shape: f32[128,128], index: 3, kind: input, shape index: {}]   ;;  %s508_s4 = inlined_call_operand.vmem [shape: f32[1,128], index: 4, kind: input, shape index: {}]   ;;  %s509_s5 = inlined_call_operand.vmem [shape: f32[1,128], index: 5, kind: input, shape index: {}]   ;;  %s510_s6 = inlined_call_operand.<no memory space> [shape: f32[1], index: 6, kind: input, shape index: {}]   ;;  %s511_s7 = inlined_call_operand.vmem [shape: f32[8,1], index: 7, kind: output, shape index: {}]  }
   0x1   :  { %14 = vsyncpa [#allocation6], 0  ;;  %s411_s24 = smov [#allocation5]  }
   0x2   :  { %s30_s25 = sshll.u32 %s411_s24, 4  ;;  %s31_s25 = int_to_ptr.vmem [resolvable:$true] %s30_s25 }
   0x3   :  { %s355_s26 = scalar_lea.vmem %s31_s25, 512  ;;  %p360_p1 = scmp.lt.s32.totalorder %s31_s25, %s31_s25 }
   0x4   :  { %p356_p0 = scmp.ne.s32.totalorder %s31_s25, %s355_s26  ;;  %p361_p2 = scmp.lt.s32.totalorder %s355_s26, %s355_s26 }
   0x6   :  { %p362_p3 = por %p361_p2, %p360_p1 }
   0x8   :  { %p363_p4 = pnand %p362_p3, %p356_p0 }
   0xa   :  { %366 = shalt.err (!%p363_p4)
}
   0xb   :  { %s412_s27 = smov 128   ;;  %s413_s28 = smov 8  }
   0xc   :  { %36 = dma.hbm_to_vmem [thread:$0]  %s505_s1, 512, %s31_s25, [#allocation6], %s412_s27, %s412_s27, %s413_s28  }
   0xd   :  { %s414_s8 = smov [#allocation3]   ;;  %s415_s10 = smov [#allocation7]  }
   0xe   :  { %s21_s9 = sshll.u32 %s414_s8, 4  ;;  %s44_s11 = sshll.u32 %s415_s10, 4  ;;  %s22_s9 = int_to_ptr.vmem [resolvable:$true] %s21_s9  ;;  %s45_s11 = int_to_ptr.vmem [resolvable:$true] %s44_s11 }
   0xf   :  { %s375_s12 = scalar_lea.vmem %s22_s9, 128  ;;  %p380_p6 = scmp.lt.s32.totalorder %s22_s9, %s22_s9 }
  0x10   :  { %p376_p5 = scmp.ne.s32.totalorder %s22_s9, %s375_s12  ;;  %p381_p7 = scmp.lt.s32.totalorder %s375_s12, %s375_s12 }
  0x12   :  { %p382_p8 = por %p381_p7, %p380_p6 }
  0x14   :  { %p383_p9 = pnand %p382_p8, %p376_p5 }
  0x16   :  { %386 = shalt.err (!%p383_p9)
}
  0x17   :  { %24 = dma.hbm_to_vmem [thread:$0]  %s504_s0, 128, %s22_s9, [#allocation4]  }
  0x18   :  { %s395_s15 = scalar_lea.vmem %s45_s11, 2048  ;;  %p400_p11 = scmp.lt.s32.totalorder %s45_s11, %s45_s11 }
  0x19   :  { %p396_p10 = scmp.ne.s32.totalorder %s45_s11, %s395_s15  ;;  %p401_p12 = scmp.lt.s32.totalorder %s395_s15, %s395_s15 }
  0x1b   :  { %p402_p13 = por %p401_p12, %p400_p11 }
  0x1d   :  { %p403_p0 = pnand %p402_p13, %p396_p10 }
  0x1f   :  { %406 = shalt.err (!%p403_p0)
}
  0x20   :  { %50 = dma.hbm_to_vmem [thread:$0]  %s507_s3, 2048, %s45_s11, [#allocation6], %s412_s27, %s412_s27, %s413_s28  }
  0x21   :  { %407 = dma.done.wait [#allocation4], 128  }
  0x22   :  { %408 = vsyncadd [#allocation4], 4294967168 }
  0x23   :  { %409 = dma.done.wait [#allocation6], 2560  }
  0x24   :  { %410 = vsyncadd [#allocation6], 4294964736  ;;  %v416_v0 = vmov 0.0   ;;  %vm417_vm0 = vmmov 0   ;;  %v70_v1 = vld [vmem:[#allocation5 + $0x18] sm:$0xff]  ;;  %v69_v2 = vld [vmem:[#allocation5 + $0x10] sm:$0xff]  ;;  %v258_v34 = vstv %s510_s6 }
  0x25   :  { %294 = vmatprep.subr.mxu0 %v416_v0  ;;  %302 = vmatprep.mubr.msk.f32.mxu0 %vm417_vm0, %v416_v0  ;;  %v168_v3 = vld [vmem:[#allocation7 + $0x78] sm:$0xff]  ;;  %v68_v4 = vld [vmem:[#allocation5 + $0x8] sm:$0xff]  ;;  %v167_v5 = vld [vmem:[#allocation7 + $0x70] sm:$0xff]  ;;  %vm78_vm1 = vcmask 261120   ;;  %vm260_vm2 = vcmask 7168  }
  0x26   :  { %305 = vmatprep.subr.mxu1 %v416_v0  ;;  %337 = vmatprep.mubr.msk.f32.mxu1 %vm417_vm0, %v416_v0  ;;  %v166_v6 = vld [vmem:[#allocation7 + $0x68] sm:$0xff]  ;;  %v67_v7 = vld [vmem:[#allocation5] sm:$0xff]  ;;  %v66_v8 = vld [vmem:[#allocation3] sm:$0xff] }
  0x27   :  { %295 = vmatpush3.msra.mxu0 %v70_v1  ;;  %306 = vmatpush3.msra.mxu1 %v168_v3  ;;  %v165_v9 = vld [vmem:[#allocation7 + $0x60] sm:$0xff]  ;;  %v164_v10 = vld [vmem:[#allocation7 + $0x58] sm:$0xff]  ;;  %v163_v11 = vld [vmem:[#allocation7 + $0x50] sm:$0xff] }
  0x28   :  { %296 = vmatprep.subr.mxu0 %v416_v0  ;;  %307 = vmatprep.subr.mxu1 %v416_v0  ;;  %v162_v12 = vld [vmem:[#allocation7 + $0x48] sm:$0xff]  ;;  %v161_v13 = vld [vmem:[#allocation7 + $0x40] sm:$0xff]  ;;  %v160_v14 = vld [vmem:[#allocation7 + $0x38] sm:$0xff] }
  0x29   :  { %297 = vmatpush3.msra.mxu0 %v69_v2  ;;  %308 = vmatpush3.msra.mxu1 %v167_v5  ;;  %v159_v15 = vld [vmem:[#allocation7 + $0x30] sm:$0xff]  ;;  %v158_v16 = vld [vmem:[#allocation7 + $0x28] sm:$0xff]  ;;  %v157_v17 = vld [vmem:[#allocation7 + $0x20] sm:$0xff] }
  0x2a   :  { %298 = vmatprep.subr.mxu0 %v416_v0  ;;  %309 = vmatprep.subr.mxu1 %v416_v0  ;;  %v156_v18 = vld [vmem:[#allocation7 + $0x18] sm:$0xff]  ;;  %v155_v19 = vld [vmem:[#allocation7 + $0x10] sm:$0xff]  ;;  %v154_v20 = vld [vmem:[#allocation7 + $0x8] sm:$0xff] }
  0x2b   :  { %299 = vmatpush3.msra.mxu0 %v68_v4  ;;  %310 = vmatpush3.msra.mxu1 %v166_v6  ;;  %v153_v21 = vld [vmem:[#allocation7] sm:$0xff]  ;;  %v268_v22 = vld [vmem:[%s506_s2] ss:$0 sm:$0xff] }
  0x2c   :  { %300 = vmatprep.subr.mxu0 %v416_v0  ;;  %311 = vmatprep.subr.mxu1 %v416_v0  ;;  %v270_v27 = vld [vmem:[%s508_s4] ss:$0 sm:$0xff] }
  0x2d   :  { %301 = vmatpush3.msra.mxu0 %v67_v7  ;;  %312 = vmatpush3.msra.mxu1 %v165_v9  ;;  %v271_v31 = vld [vmem:[%s509_s5] ss:$0 sm:$0xff] }
  0x2e   :  { %303 = vmatmul.mubr.msk.f32.vlgmr.msra.gmra.mxu0 %vm78_vm1, %v66_v8  ;;  %313 = vmatprep.subr.mxu1 %v416_v0 }
  0x2f   :  { %314 = vmatpush3.msra.mxu1 %v164_v10 }
  0x30   :  { %315 = vmatprep.subr.mxu1 %v416_v0 }
  0x31   :  { %316 = vmatpush3.msra.mxu1 %v163_v11 }
  0x32   :  { %317 = vmatprep.subr.mxu1 %v416_v0 }
  0x33   :  { %318 = vmatpush3.msra.mxu1 %v162_v12 }
  0x34   :  { %319 = vmatprep.subr.mxu1 %v416_v0 }
  0x35   :  { %320 = vmatpush3.msra.mxu1 %v161_v13 }
  0x36   :  { %321 = vmatprep.subr.mxu1 %v416_v0 }
  0x37   :  { %322 = vmatpush3.msra.mxu1 %v160_v14 }
  0x38   :  { %323 = vmatprep.subr.mxu1 %v416_v0 }
  0x39   :  { %324 = vmatpush3.msra.mxu1 %v159_v15 }
  0x3a   :  { %325 = vmatprep.subr.mxu1 %v416_v0 }
  0x3b   :  { %326 = vmatpush3.msra.mxu1 %v158_v16 }
  0x3c   :  { %327 = vmatprep.subr.mxu1 %v416_v0 }
  0x3d   :  { %328 = vmatpush3.msra.mxu1 %v157_v17 }
  0x3e   :  { %329 = vmatprep.subr.mxu1 %v416_v0 }
  0x3f   :  { %330 = vmatpush3.msra.mxu1 %v156_v18 }
  0x40   :  { %331 = vmatprep.subr.mxu1 %v416_v0 }
  0x41   :  { %332 = vmatpush3.msra.mxu1 %v155_v19 }
  0x42   :  { %333 = vmatprep.subr.mxu1 %v416_v0 }
  0x43   :  { %334 = vmatpush3.msra.mxu1 %v154_v20 }
  0x44   :  { %335 = vmatprep.subr.mxu1 %v416_v0 }
  0x45   :  { %336 = vmatpush3.msra.mxu1 %v153_v21 }
  0xee   :  { %v148_v23 = vpop.f32.mrf.mxu0 }
  0xef   :  { %v149_v24 = vadd.f32 %v268_v22, %v148_v23 }
  0xf0   :  { %v304_v25 = vpop.f32.mrf.mxu0 }
  0xf1   :  { %v152_v26 = vmax.f32 %v149_v24, 0.0 }
  0xf3   :  { %338 = vmatmul.mubr.f32.vlgmr.msra.gmra.mxu1 %v152_v26 }
 0x1b3   :  { %v242_v28 = vpop.f32.mrf.mxu1 }
 0x1b4   :  { %v243_v29 = vadd.f32 %v270_v27, %v242_v28 }
 0x1b5   :  { %v339_v30 = vpop.f32.mrf.mxu1 }
 0x1b6   :  { %v246_v32 = vmax.f32 %v243_v29, 0.0 }
 0x1b8   :  { %v254_v33 = vmul.f32 %v271_v31, %v246_v32 }
 0x1ba   :  { %255 = vadd.xlane.f32.xlu0 %v254_v33 }
 0x243   :  { %v256_v35 = vpop.xlane.xlu0 %255 }
 0x244   :  { %v259_v36 = vadd.f32 %v258_v34, %v256_v35 }
 0x246   :  { %261 = vst.msk [vmem:[%s511_s7] sm:$0xff] %vm260_vm2, %v259_v36 }
 0x247   :  { %266 = vsyncpa [#allocation4], 1 }
 0x248   :  { %267 = vsyncpa [#allocation6], 1 }

</bundles_post_ra>
